<compile_context>
chip_gen: v7x
topology: tpu7x:2x2x1
jax: 0.10.0
libtpu: 0.0.40
codegen_flags: <defaults>
</compile_context>

<pallas_src>
import functools

import jax
import jax.numpy as jnp
from jax import lax
from jax.experimental import pallas as pl
from jax.experimental.pallas import tpu as pltpu


# ----------------------------- Pallas kernel ------------------------------- #
def _isometry_kernel(coeff_ref, jac_ref, out_ref, acc_ref,
                     *, m, bt, scale, dt, d_total):
    # coeff_ref: (bt, 1)       f32  per-sample coeff = change * delta^2 / eps^2
    # jac_ref:   (bt*m, dt)    bf16 Jacobian tile (m consecutive rows / sample)
    # out_ref:   (bt, 1)       f32  per-sample regularizer
    # acc_ref:   (bt*m, bt*m)  f32  Gram-slab accumulator (VMEM scratch)
    k = pl.program_id(1)
    nk = pl.num_programs(1)
    R = bt * m

    @pl.when(k == 0)
    def _init():
        acc_ref[...] = jnp.zeros_like(acc_ref)

    # Hot path: stream the bf16 Jacobian tile, accumulate the Gram slab on the
    # MXU in f32.  HBM-bandwidth bound (~2*bt*m flop/byte), so the optional
    # ragged-tile masking below is free VALU filler.
    J = jac_ref[...]                                              # (R, dt) bf16
    if d_total % dt:
        # Ragged last D tile: zero the columns past D instead of padding the
        # Jacobian in HBM (avoids a full extra HBM read/write pass).
        col = lax.broadcasted_iota(jnp.int32, J.shape, 1)
        J = jnp.where(k * dt + col < d_total, J, jnp.zeros_like(J))
    acc_ref[...] += lax.dot_general(
        J, J, (((1,), (1,)), ((), ())),
        preferred_element_type=jnp.float32)                       # (R, R)

    @pl.when(k == nk - 1)
    def _finalize():
        F = acc_ref[...]                                          # (R, R) f32
        coeff = coeff_ref[...].astype(jnp.float32)                # (bt, 1)

        # Row -> sample selector: S[b, r] = 1 iff Gram row r belongs to sample
        # b (rows of sample b are [b*m, b*m + m); no integer division needed).
        r_idx = lax.broadcasted_iota(jnp.int32, (bt, R), 1)
        b_lo = lax.broadcasted_iota(jnp.int32, (bt, R), 0) * m
        S = ((r_idx >= b_lo) & (r_idx < b_lo + m)).astype(jnp.float32)  # (bt, R)

        # coeff replicated per Gram row/column: coeff_cols[0, r] = coeff[sample(r)]
        coeff_cols = jnp.sum(S * coeff, axis=0, keepdims=True)    # (1, R)

        # Explicit (G_b - coeff_b * I): numerically stable (no expanded
        # sum(G^2) - 2*coeff*tr(G) + m*coeff^2 cancellation).  Cross-sample
        # entries of F are filtered out by the S "sandwich" below.
        rr = lax.broadcasted_iota(jnp.int32, (R, R), 0)
        cc = lax.broadcasted_iota(jnp.int32, (R, R), 1)
        diff = F - jnp.where(rr == cc, coeff_cols, jnp.float32(0.0))
        dsq = diff * diff                                         # (R, R)

        # fro2[b] = sum_{i,j in block b} diff[i,j]^2
        w = lax.dot_general(S, dsq, (((1,), (0,)), ((), ())),
                            preferred_element_type=jnp.float32)   # (bt, R)
        fro2 = jnp.sum(S * w, axis=1, keepdims=True)              # (bt, 1)

        out_ref[...] = jnp.float32(scale) * jnp.sqrt(fro2)        # eps^2/n * ||.||_F


# ----------------------------- tiling helpers ------------------------------ #
def _round_up(x, a):
    return -(-x // a) * a


def _plan_batch_tiling(B, m, max_rows=128):
    """Pick (bt, B_pad):  bt*m Gram rows per tile, sublane-aligned.

    bt*m is capped at ~128 rows so the full-Gram waste stays small and the
    kernel stays HBM-bound on every generation (v5e bf16 ridge ~240 flop/B);
    bt is a multiple of 8 so (bt, 1) / (bt*m, dt) blocks are sublane-aligned.
    Non-divisible batches are padded (zero samples dropped from the mean) --
    we never fall back to bt = B for large B."""
    bt = (max_rows // m // 8) * 8
    if bt == 0:
        bt = 8                      # very large m: accept taller tiles, keep alignment
    if B <= bt:
        # TODO(synk): tiny batch -> single tile (nb = 1); v7x's second core idles.
        return B, B                 # full-dim blocks are legal even when B % 8 != 0
    return bt, _round_up(B, bt)


def _choose_d_tile(R, D, *, per_buf_cap=8 << 20, max_dt=4096):
    """Width of the streamed Jacobian tile.  Full D (single contraction step)
    whenever one double-buffered bf16 block stays well under the VMEM budget;
    otherwise a large multiple of 128 so each DMA step moves >= 512 KiB."""
    if R * D * 2 <= per_buf_cap:
        return D
    return max_dt


def _vmem_limit_bytes(bt, m, dt):
    """Scoped-VMEM limit derived from actual buffer sizes (+50% + 1 MiB headroom).
    Keeps the limit honest on v7x (64 MiB physical) and above the v5e 16 MiB
    default only when actually needed."""
    R = bt * m
    jac_blk = _round_up(R, 16) * _round_up(dt, 128) * 2           # bf16 input block
    small_blk = _round_up(max(bt, 8), 8) * 128 * 4                # coeff / out f32 blocks
    acc = _round_up(R, 8) * _round_up(R, 128) * 4                 # Gram scratch
    need = 2 * jac_blk + 4 * small_blk + acc                      # double-buffered I/O
    return max(int(need * 1.5) + (1 << 20), 4 << 20)


# ----------------------------- pallas wrapper ------------------------------ #
def isometry_reg_pallas(coeff, jac2d, *, batch_pad, m, n, epsilon, bt, dt, d_total):
    R = bt * m
    nb = batch_pad // bt
    nk = pl.cdiv(d_total, dt)
    kernel = functools.partial(
        _isometry_kernel, m=m, bt=bt,
        scale=float(epsilon) ** 2 / float(n), dt=dt, d_total=d_total)
    return pl.pallas_call(
        kernel,
        out_shape=jax.ShapeDtypeStruct((batch_pad, 1), jnp.float32),
        grid=(nb, nk),
        in_specs=[
            pl.BlockSpec((bt, 1), lambda i, k: (i, 0)),
            pl.BlockSpec((R, dt), lambda i, k: (i, k)),
        ],
        out_specs=pl.BlockSpec((bt, 1), lambda i, k: (i, 0)),
        scratch_shapes=[pltpu.VMEM((R, R), jnp.float32)],
        compiler_params=pltpu.CompilerParams(
            dimension_semantics=("parallel", "arbitrary"),
            vmem_limit_bytes=_vmem_limit_bytes(bt, m, dt),
        ),
    )(coeff, jac2d)


# ------------------------------- JAX glue ---------------------------------- #
def _new_output_single(x_flat, Wm, b, c, m, num_stab):
    """Per-sample map data -> new_output (the thing PyTorch differentiates)."""
    logits = x_flat @ Wm + b                                      # (c,)
    p = jax.nn.softmax(logits) * (1.0 - c * num_stab) + num_stab
    s = jnp.sqrt(p)
    return 2.0 * s[:m] / (1.0 - s[m])                             # (m,)


def isometry_reg_forward(data, Wm, b, epsilon, num_stab=1e-6):
    B, C, H, Wd = data.shape
    n = H * Wd
    c = Wm.shape[1]
    m = c - 1
    D = C * H * Wd
    x = data.reshape(B, D)

    logits = x @ Wm + b                                           # external "model"
    p = jax.nn.softmax(logits, axis=1) * (1.0 - c * num_stab) + num_stab  # (B, c) > 0

    # TODO(synk): PyTorch differentiates an arbitrary external network with
    # torch.autograd.grad; here the Jacobian of the synthetic linear+softmax
    # map is computed with jax.jacrev in plain JAX (no Pallas autodiff).
    jac = jax.vmap(
        jax.jacrev(lambda xi: _new_output_single(xi, Wm, b, c, m, num_stab))
    )(x)                                                          # (B, m, D)

    # Per-sample coeff = change * delta^2 / eps^2 (all scalar math in f32 glue
    # so the kernel only streams the Jacobian plus one (B, 1) column).
    pm = p[:, m]
    l1 = jnp.sum(jnp.abs(p[:, :m]), axis=1)                       # p > 0 -> plain sum
    # NOTE: like the PyTorch original, the denominator is unguarded and can be
    # arbitrarily close to zero (coeff -> inf); semantics preserved.
    change = pm / jnp.square(2.0 * jnp.sqrt(pm) - l1)
    # TODO(synk): arccos has no guaranteed Mosaic lowering; delta stays in glue.
    delta = 2.0 * jnp.arccos(jnp.clip(jnp.sum(jnp.sqrt(p / c), axis=1), -1.0, 1.0))
    coeff = (change * delta * delta / (epsilon * epsilon))[:, None].astype(jnp.float32)

    # Sublane-dense 2-D layout; bf16 halves the bandwidth-bound HBM read of
    # the Jacobian (the kernel accumulates the Gram matrix in f32 on the MXU).
    jac2d = jac.reshape(B * m, D).astype(jnp.bfloat16)

    bt, B_pad = _plan_batch_tiling(B, m)
    if B_pad != B:
        # Row-pad only (zero Jacobian rows / zero coeff for padded samples,
        # dropped from the mean below).  The D axis is never padded in HBM.
        jac2d = jnp.pad(jac2d, ((0, (B_pad - B) * m), (0, 0)))
        coeff = jnp.pad(coeff, ((0, B_pad - B), (0, 0)))
    dt = _choose_d_tile(bt * m, D)

    reg = isometry_reg_pallas(coeff, jac2d, batch_pad=B_pad, m=m, n=n,
                              epsilon=epsilon, bt=bt, dt=dt, d_total=D)
    return jnp.mean(reg[:B, 0])


def isometry_reg_reference(data, Wm, b, epsilon, num_stab=1e-6):
    """Pure-JAX (f32) reference mirroring the PyTorch forward exactly."""
    B, C, H, Wd = data.shape
    n = H * Wd
    c = Wm.shape[1]
    m = c - 1
    x = data.reshape(B, -1)
    logits = x @ Wm + b
    p = jax.nn.softmax(logits, axis=1) * (1.0 - c * num_stab) + num_stab
    jac = jax.vmap(
        jax.jacrev(lambda xi: _new_output_single(xi, Wm, b, c, m, num_stab))
    )(x)                                                          # (B, m, D)
    G = jnp.einsum("bmd,bnd->bmn", jac, jac)                      # (B, m, m)
    change = p[:, m] / jnp.square(
        2.0 * jnp.sqrt(p[:, m]) - jnp.sum(jnp.abs(p[:, :m]), axis=1))
    delta = 2.0 * jnp.arccos(jnp.clip(jnp.sum(jnp.sqrt(p / c), axis=1), -1.0, 1.0))
    eye = jnp.eye(m, dtype=jnp.float32)
    change_mat = change[:, None, None] * eye[None] * (delta ** 2)[:, None, None] / (epsilon ** 2)
    diff = (G - change_mat).reshape(B, -1)
    reg = (epsilon ** 2) / n * jnp.sqrt(jnp.sum(diff * diff, axis=1))
    return jnp.mean(reg)


# --------------------------------- main ------------------------------------ #
if __name__ == "__main__":
    key = jax.random.PRNGKey(0)
    kd, kw, kb = jax.random.split(key, 3)

    B, C, H, Wd = 2, 4, 16, 16          # data: NCHW
    c = 10                              # number of classes -> m = 9
    D = C * H * Wd
    epsilon = 0.1

    data = jax.random.normal(kd, (B, C, H, Wd), dtype=jnp.float32)
    Wm = jax.random.normal(kw, (D, c), dtype=jnp.float32) * 0.05   # synthetic "network"
    b = jax.random.normal(kb, (c,), dtype=jnp.float32) * 0.01

    reg = jax.block_until_ready(isometry_reg_forward(data, Wm, b, epsilon))
    ref = jax.block_until_ready(isometry_reg_reference(data, Wm, b, epsilon))

    # bf16 Jacobian stream -> slightly looser tolerance than a pure-f32 path.
    if not (bool(jnp.isfinite(reg)) and jnp.allclose(reg, ref, rtol=2e-2, atol=1e-5)):
        raise AssertionError(f"mismatch: pallas={reg} ref={ref}")

    print("KERNEL_OK")
</pallas_src>

<mosaic_0001>
module attributes {stable_mosaic.version = 11 : i64} {
  func.func @_isometry_kernel(%arg0: i32, %arg1: i32, %arg2: memref<2x1xf32, #tpu.memory_space<vmem>>, %arg3: memref<18x1024xbf16, #tpu.memory_space<vmem>>, %arg4: memref<2x1xf32, #tpu.memory_space<vmem>>, %arg5: memref<18x18xf32, #tpu.memory_space<vmem>>) attributes {dimension_semantics = [#tpu.dimension_semantics<parallel>, #tpu.dimension_semantics<arbitrary>], iteration_bounds = array<i64: 1, 1>, scalar_prefetch = 0 : i64, scratch_operands = 1 : i64, tpu.core_type = #tpu.core_type<tc>, window_params = [{transform_indices = @transform_0, window_bounds = array<i64: 2, 1>}, {transform_indices = @transform_1, window_bounds = array<i64: 18, 1024>}, {transform_indices = @transform_2, window_bounds = array<i64: 2, 1>}]} {
    %c0_i32 = arith.constant 0 : i32
    %0 = arith.cmpi eq, %arg1, %c0_i32 : i32
    %1 = arith.extui %0 : i1 to i32
    %c0_i32_0 = arith.constant 0 : i32
    %2 = arith.cmpi ne, %1, %c0_i32_0 : i32
    scf.if %2 {
      %cst_8 = arith.constant 0.000000e+00 : f32
      %11 = vector.broadcast %cst_8 : f32 to vector<18x18xf32>
      %c0_9 = arith.constant 0 : index
      %c0_10 = arith.constant 0 : index
      %12 = vector.load %arg5[%c0_9, %c0_10] : memref<18x18xf32, #tpu.memory_space<vmem>>, vector<18x18xf32>
      tpu.vector_store %arg5[%c0_9, %c0_10], %11 {strides = array<i32>} : memref<18x18xf32, #tpu.memory_space<vmem>>, vector<18x18xf32>,
    } else {
    }
    %c0 = arith.constant 0 : index
    %c0_1 = arith.constant 0 : index
    %3 = vector.load %arg3[%c0, %c0_1] : memref<18x1024xbf16, #tpu.memory_space<vmem>>, vector<18x1024xbf16>
    %c0_2 = arith.constant 0 : index
    %c0_3 = arith.constant 0 : index
    %4 = vector.load %arg5[%c0_2, %c0_3] : memref<18x18xf32, #tpu.memory_space<vmem>>, vector<18x18xf32>
    %cst = arith.constant dense<0.000000e+00> : vector<18x18xf32>
    %5 = tpu.matmul %3, %3, %cst {dimension_numbers = #tpu.dot_dimension_numbers<[1], [1], [0], [0], [0, 0, 1, 0], [], []>} : vector<18x1024xbf16>, vector<18x1024xbf16>, vector<18x18xf32> -> vector<18x18xf32>
    %6 = arith.addf %4, %5 : vector<18x18xf32>
    %c0_4 = arith.constant 0 : index
    %c0_5 = arith.constant 0 : index
    %7 = vector.load %arg5[%c0_4, %c0_5] : memref<18x18xf32, #tpu.memory_space<vmem>>, vector<18x18xf32>
    tpu.vector_store %arg5[%c0_4, %c0_5], %6 {strides = array<i32>} : memref<18x18xf32, #tpu.memory_space<vmem>>, vector<18x18xf32>,
    %c0_i32_6 = arith.constant 0 : i32
    %8 = arith.cmpi eq, %arg1, %c0_i32_6 : i32
    %9 = arith.extui %8 : i1 to i32
    %c0_i32_7 = arith.constant 0 : i32
    %10 = arith.cmpi ne, %9, %c0_i32_7 : i32
    scf.if %10 {
      %c0_8 = arith.constant 0 : index
      %c0_9 = arith.constant 0 : index
      %11 = vector.load %arg5[%c0_8, %c0_9] : memref<18x18xf32, #tpu.memory_space<vmem>>, vector<18x18xf32>
      %c0_10 = arith.constant 0 : index
      %c0_11 = arith.constant 0 : index
      %12 = vector.load %arg2[%c0_10, %c0_11] : memref<2x1xf32, #tpu.memory_space<vmem>>, vector<2x1xf32>
      %13 = tpu.iota {dimensions = array<i32: 1>} : vector<2x18xi32>
      %14 = tpu.iota {dimensions = array<i32: 0>} : vector<2x18xi32>
      %c9_i32 = arith.constant 9 : i32
      %15 = vector.broadcast %c9_i32 : i32 to vector<2x18xi32>
      %16 = arith.muli %14, %15 : vector<2x18xi32>
      %17 = arith.cmpi sge, %13, %16 : vector<2x18xi32>
      %c9_i32_12 = arith.constant 9 : i32
      %18 = vector.broadcast %c9_i32_12 : i32 to vector<2x18xi32>
      %19 = arith.addi %16, %18 : vector<2x18xi32>
      %20 = arith.cmpi slt, %13, %19 : vector<2x18xi32>
      %21 = arith.andi %17, %20 : vector<2x18xi1>
      %22 = arith.extui %21 : vector<2x18xi1> to vector<2x18xi32>
      %23 = arith.sitofp %22 : vector<2x18xi32> to vector<2x18xf32>
      %24 = vector.broadcast %12 : vector<2x1xf32> to vector<2x18xf32>
      %25 = arith.mulf %23, %24 : vector<2x18xf32>
      %cst_13 = arith.constant dense<0.000000e+00> : vector<18xf32>
      %26 = vector.multi_reduction <add>, %25, %cst_13 [0] : vector<2x18xf32> to vector<18xf32>
      %27 = vector.shape_cast %26 : vector<18xf32> to vector<1x18xf32>
      %28 = tpu.iota {dimensions = array<i32: 0>} : vector<18x18xi32>
      %29 = tpu.iota {dimensions = array<i32: 1>} : vector<18x18xi32>
      %30 = arith.cmpi eq, %28, %29 : vector<18x18xi32>
      %cst_14 = arith.constant 0.000000e+00 : f32
      %31 = vector.shape_cast %27 : vector<1x18xf32> to vector<1x18xf32>
      %32 = vector.broadcast %31 : vector<1x18xf32> to vector<18x18xf32>
      %33 = vector.broadcast %cst_14 : f32 to vector<18x18xf32>
      %34 = arith.select %30, %32, %33 : vector<18x18xi1>, vector<18x18xf32>
      %35 = arith.subf %11, %34 : vector<18x18xf32>
      %36 = arith.mulf %35, %35 : vector<18x18xf32>
      %cst_15 = arith.constant dense<0.000000e+00> : vector<2x18xf32>
      %37 = tpu.matmul %23, %36, %cst_15 {dimension_numbers = #tpu.dot_dimension_numbers<[1], [0], [0], [1], [0, 0, 1, 1], [], []>} : vector<2x18xf32>, vector<18x18xf32>, vector<2x18xf32> -> vector<2x18xf32>
      %38 = arith.mulf %23, %37 : vector<2x18xf32>
      %cst_16 = arith.constant dense<0.000000e+00> : vector<2xf32>
      %39 = vector.multi_reduction <add>, %38, %cst_16 [1] : vector<2x18xf32> to vector<2xf32>
      %40 = vector.shape_cast %39 : vector<2xf32> to vector<2x1xf32>
      %41 = math.sqrt %40 : vector<2x1xf32>
      %cst_17 = arith.constant 3.906250e-05 : f32
      %42 = vector.broadcast %cst_17 : f32 to vector<2x1xf32>
      %43 = arith.mulf %42, %41 : vector<2x1xf32>
      %c0_18 = arith.constant 0 : index
      %c0_19 = arith.constant 0 : index
      %44 = vector.load %arg4[%c0_18, %c0_19] : memref<2x1xf32, #tpu.memory_space<vmem>>, vector<2x1xf32>
      tpu.vector_store %arg4[%c0_18, %c0_19], %43 {strides = array<i32>} : memref<2x1xf32, #tpu.memory_space<vmem>>, vector<2x1xf32>,
    } else {
    }
    return
  }
  func.func @transform_0(%arg0: i32, %arg1: i32) -> (i32, i32) {
    %c0_i32 = arith.constant 0 : i32
    %c0_i32_0 = arith.constant 0 : i32
    return %arg0, %c0_i32 : i32, i32
  }
  func.func @transform_1(%arg0: i32, %arg1: i32) -> (i32, i32) {
    %c0_i32 = arith.constant 0 : i32
    return %arg0, %arg1 : i32, i32
  }
  func.func @transform_2(%arg0: i32, %arg1: i32) -> (i32, i32) {
    %c0_i32 = arith.constant 0 : i32
    %c0_i32_0 = arith.constant 0 : i32
    return %arg0, %c0_i32 : i32, i32
  }
}

</mosaic_0001>

<bundles_post_ra>
// kernel: tpu_custom_call.1
= control target key start
LH: loop header
LB: loop body
LE: loop exit
PB: predicated region body
PF: predicated region fallthrough
CT: control target
= control target key end

     0   :  { %7 = vsyncpa [#allocation4], 0  ;;  %s536_s9 = smov [#allocation3]   ;;  %s609_s0 = inlined_call_operand.vmem [shape: f32[2,1], index: 0, kind: input, shape index: {}]   ;;  %s610_s1 = inlined_call_operand.hbm [shape: bf16[18,1024], index: 1, kind: input, shape index: {}]   ;;  %s611_s2 = inlined_call_operand.vmem [shape: f32[2,1], index: 2, kind: output, shape index: {}]  }
   0x1   :  { %s15_s10 = sshll.u32 %s536_s9, 4  ;;  %s512_s13 = scalar_lea.hbm %s610_s1, 1536  ;;  %s16_s10 = int_to_ptr.vmem [resolvable:$true] %s15_s10 }
   0x2   :  { %p513_p0 = scmp.ne.s32.totalorder %s610_s1, %s512_s13  ;;  %p516_p1 = scmp.lt.u32.totalorder %s512_s13, %s610_s1 }
   0x4   :  { %p518_p2 = pnand %p516_p1, %p513_p0 }
   0x6   :  { %521 = shalt.err (!%p518_p2)
}
   0x7   :  { %s522_s18 = scalar_lea.vmem %s16_s10, 1536  ;;  %p527_p4 = scmp.lt.s32.totalorder %s16_s10, %s16_s10 }
   0x8   :  { %p523_p3 = scmp.ne.s32.totalorder %s16_s10, %s522_s18  ;;  %p528_p5 = scmp.lt.s32.totalorder %s522_s18, %s522_s18 }
   0xa   :  { %p529_p6 = por %p528_p5, %p527_p4 }
   0xc   :  { %p530_p7 = pnand %p529_p6, %p523_p3 }
   0xe   :  { %533 = shalt.err (!%p530_p7)
}
   0xf   :  { %s537_s19 = smov 512   ;;  %s538_s20 = smov 32  }
  0x10   :  { %21 = dma.hbm_to_vmem [thread:$0]  %s610_s1, 1536, %s16_s10, [#allocation4], %s537_s19, %s537_s19, %s538_s20  }
  0x11   :  { %534 = dma.done.wait [#allocation4], 1536  }
  0x12   :  { %535 = vsyncadd [#allocation4], 4294965760  ;;  %v539_v0 = vmov 0   ;;  %v35_v1 = vld [vmem:[#allocation3] sm:$0xff]  ;;  %v36_v3 = vld [vmem:[#allocation3 + $0x8] sm:$0xff]  ;;  %vm33_vm0 = vcmask 140288   ;;  %v325_v32 = vlaneseq }
  0x13   :  { %501 = vset.pattern.permute.xlu0 %v539_v0  ;;  %v39_v2 = vld [vmem:[#allocation3 + $0x20] sm:$0xff]  ;;  %v40_v5 = vld [vmem:[#allocation3 + $0x28] sm:$0xff]  ;;  %v37_v14 = vld [vmem:[#allocation3 + $0x10] sm:$0xff]  ;;  %v540_v30 = vmov 0.0   ;;  %vm30_vm1 = vcmask 146432   ;;  %v541_v31 = vmov 0.0|0.0  }
  0x14   :  { %v460_v4 = vcombine.high %v35_v1, %v39_v2  ;;  %v459_v6 = vcombine.low %v35_v1, %v39_v2  ;;  %v43_v7 = vld [vmem:[#allocation3 + $0x40] sm:$0x11]  ;;  %v44_v8 = vld [vmem:[#allocation3 + $0x48] sm:$0x11]  ;;  %v462_v9 = vcombine.high %v36_v3, %v40_v5  ;;  %v461_v10 = vcombine.low %v36_v3, %v40_v5  ;;  %v41_v15 = vld [vmem:[#allocation3 + $0x30] sm:$0xff]  ;;  %31 = vst.msk [vmem:[#allocation2] sm:$0xff] %vm30_vm1, %v540_v30 }
  0x15   :  { %v468_v11 = vcombine.high %v43_v7, %v43_v7  ;;  %v470_v12 = vcombine.high %v44_v8, %v44_v8  ;;  %v324_v13 = vld [vmem:[%s609_s0] sm:$0x3]  ;;  %v38_v16 = vld [vmem:[#allocation3 + $0x18] sm:$0xff]  ;;  %v467_v18 = vcombine.low %v43_v7, %v43_v7  ;;  %v469_v19 = vcombine.low %v44_v8, %v44_v8  ;;  %v45_v22 = vld [vmem:[#allocation3 + $0x50] sm:$0x11]  ;;  %32 = vst.msk [vmem:[#allocation2 + $0x8] sm:$0xff] %vm30_vm1, %v540_v30 }
  0x16   :  { %118 = vmatprep.subr.bf16.mxu0 %v460_v4  ;;  %150 = vmatprep.mubr.bf16.mxu0 %v460_v4  ;;  %v42_v17 = vld [vmem:[#allocation3 + $0x38] sm:$0xff]  ;;  %v464_v20 = vcombine.high %v37_v14, %v41_v15  ;;  %v463_v23 = vcombine.low %v37_v14, %v41_v15  ;;  %v472_v26 = vcombine.high %v45_v22, %v45_v22  ;;  %vm542_vm2 = vmmov 0  }
  0x17   :  { %166 = vmatprep.subr.bf16.mxu1 %v462_v9  ;;  %119 = vmatpush1.bf16.xpose.msra.mxu0 %v459_v6  ;;  %v466_v21 = vcombine.high %v38_v16, %v42_v17  ;;  %v46_v24 = vld [vmem:[#allocation3 + $0x58] sm:$0x11]  ;;  %v465_v25 = vcombine.low %v38_v16, %v42_v17  ;;  %v471_v28 = vcombine.low %v45_v22, %v45_v22  ;;  %v580_v33 = vshrl.u32 %v325_v32, 7 }
  0x18   :  { %167 = vmatpush1.bf16.xpose.msra.mxu1 %v461_v10  ;;  %120 = vmatprep.subr.bf16.mxu0 %v468_v11  ;;  %v474_v27 = vcombine.high %v46_v24, %v46_v24  ;;  %v473_v29 = vcombine.low %v46_v24, %v46_v24  ;;  %34 = vst.msk [vmem:[#allocation2 + $0x10] sm:$0x3] %vm33_vm0, %v540_v30  ;;  %v583_v35 = vand.u32 127, %v325_v32  ;;  %vm366_vm9 = vcmask 1041408  }
  0x19   :  { %168 = vmatprep.subr.bf16.mxu1 %v470_v12  ;;  %198 = vmatprep.mubr.bf16.mxu1 %v462_v9  ;;  %v329_v34 = vmul.u32 9, %v580_v33  ;;  %vm452_vm12 = vcmask 1024  }
  0x1a   :  { %338 = vperm.xlu0 %501, %v324_v13   ;;  %vm351_vm6 = vcmp.eq.s32.totalorder %v580_v33, %v583_v35 }
  0x1b   :  { %v331_v36 = vadd.s32 9, %v329_v34  ;;  %vm330_vm3 = vcmp.ge.s32.totalorder %v583_v35, %v329_v34  ;;  %v47_v4 = vld [vmem:[#allocation2] sm:$0xff] }
  0x1d   :  { %vm332_vm4 = vcmp.lt.s32.totalorder %v583_v35, %v331_v36  ;;  %v350_v36 = vadd.s32 16, %v580_v33 }
  0x1e   :  { %vm333_vm5 = vmand %vm330_vm3, %vm332_vm4 }
  0x1f   :  { %121 = vmatpush1.bf16.xpose.msra.mxu0 %v467_v18  ;;  %v588_v37 = vsel %vm333_vm5, 1.0, %v540_v30  ;;  %vm353_vm8 = vcmp.eq.s32.totalorder %v350_v36, %v583_v35 }
  0x20   :  { %169 = vmatpush1.bf16.xpose.msra.mxu1 %v469_v19  ;;  %214 = vmatprep.subr.bf16.mxu0 %v464_v20 }
  0x21   :  { %262 = vmatprep.subr.bf16.mxu1 %v466_v21 }
  0x26   :  { %151 = vmatmul.mubr.bf16.vlgmr.msra.gmra.mrb[0].mxu0 %v459_v6 }
  0x27   :  { %199 = vmatmul.mubr.bf16.vlgmr.msra.gmra.mrb[0].mxu1 %v461_v10  ;;  %215 = vmatpush1.bf16.xpose.msra.mxu0 %v463_v23 }
  0x28   :  { %263 = vmatpush1.bf16.xpose.msra.mxu1 %v465_v25  ;;  %158 = vmatprep.mubr.bf16.mxu0 %v468_v11  ;;  %v48_v11 = vld [vmem:[#allocation2 + $0x8] sm:$0xff] }
  0x29   :  { %206 = vmatprep.mubr.bf16.mxu1 %v470_v12  ;;  %216 = vmatprep.subr.bf16.mxu0 %v472_v26 }
  0x2a   :  { %264 = vmatprep.subr.bf16.mxu1 %v474_v27 }
  0x2e   :  { %159 = vmatmul.mubr.bf16.gmra.mrb[4].mxu0 %v467_v18 }
  0x2f   :  { %207 = vmatmul.mubr.bf16.gmra.mrb[4].mxu1 %v469_v19  ;;  %217 = vmatpush1.bf16.xpose.msra.mxu0 %v471_v28 }
  0x30   :  { %265 = vmatpush1.bf16.xpose.msra.mxu1 %v473_v29  ;;  %246 = vmatprep.mubr.bf16.mxu0 %v464_v20 }
  0x31   :  { %294 = vmatprep.mubr.bf16.mxu1 %v466_v21  ;;  %491 = vmatprep.subr.bf16.mxu0 %v541_v31  ;;  %v349_v21 = vadd.s32 8, %v580_v33 }
  0x33   :  { %vm352_vm7 = vcmp.eq.s32.totalorder %v349_v21, %v583_v35 }
  0x36   :  { %247 = vmatmul.mubr.bf16.vlgmr.msra.gmra.mrb[8].mxu0 %v463_v23  ;;  %v49_v23 = vld [vmem:[#allocation2 + $0x10] sm:$0x3] }
  0x37   :  { %295 = vmatmul.mubr.bf16.vlgmr.msra.gmra.mrb[8].mxu1 %v465_v25  ;;  %254 = vmatprep.mubr.bf16.mxu0 %v472_v26 }
  0x38   :  { %302 = vmatprep.mubr.bf16.mxu1 %v474_v27 }
  0x3e   :  { %255 = vmatmul.mubr.bf16.gmra.mrb[12].mxu0 %v471_v28 }
  0x3f   :  { %303 = vmatmul.mubr.bf16.gmra.mrb[12].mxu1 %v473_v29  ;;  %488 = vmatprep.mubr.msk.f32.mxu0 %vm542_vm2, %v540_v30 }
  0x99   :  { %v339_v38 = vpop.permute.xlu0 %338 }
  0x9a   :  { %v341_v39 = vmul.f32 %v588_v37, %v339_v38 }
  0x9c   :  { %v342_v48 = vsel %vm33_vm0, %v341_v39, 0.0 }
  0x9d   :  { %v343_v51 = vrot.slane %v342_v48, 4 }
  0x9f   :  { %v344_v57 = vadd.f32 %v343_v51, %v342_v48 }
  0xa1   :  { %v345_v62 = vrot.slane %v344_v57, 2 }
  0xa3   :  { %v346_v3 = vadd.f32 %v345_v62, %v344_v57 }
  0xa5   :  { %v347_v15 = vrot.slane %v346_v3, 1 }
  0xa7   :  { %v348_v22 = vadd.f32 %v347_v15, %v346_v3 }
  0xa9   :  { %v354_v34 = vsel %vm351_vm6, %v348_v22, 0.0 }
  0xf9   :  { %v152_v40 = vpop.f32.mrb[0].mxu0 }
  0xfa   :  { %v200_v41 = vpop.f32.mrb[0].mxu1  ;;  %v154_v42 = vpop.f32.mrb[1].mxu0 }
  0xfb   :  { %v201_v43 = vadd.f32 %v200_v41, %v152_v40  ;;  %v202_v44 = vpop.f32.mrb[1].mxu1  ;;  %v155_v45 = vpop.f32.mrb[2].mxu0  ;;  %v355_v40 = vsel %vm352_vm7, %v348_v22, 0.0 }
  0xfc   :  { %v203_v46 = vpop.f32.mrb[2].mxu1  ;;  %v157_v47 = vpop.f32.mrb[3].mxu0 }
  0xfd   :  { %v204_v49 = vadd.f32 %v203_v46, %v155_v45  ;;  %v205_v50 = vpop.f32.mrb[3].mxu1  ;;  %v356_v45 = vsel %vm353_vm8, %v348_v22, 0.0 }
 0x101   :  { %v160_v52 = vpop.f32.mrb[4].mxu0 }
 0x102   :  { %v208_v53 = vpop.f32.mrb[4].mxu1  ;;  %v162_v54 = vpop.f32.mrb[5].mxu0 }
 0x103   :  { %v209_v55 = vadd.f32 %v208_v53, %v160_v52  ;;  %v210_v56 = vpop.f32.mrb[5].mxu1  ;;  %v163_v58 = vpop.f32.mrb[6].mxu0 }
 0x104   :  { %v211_v59 = vpop.f32.mrb[6].mxu1  ;;  %v164_v60 = vpop.f32.mrb[7].mxu0 }
 0x105   :  { %v212_v61 = vpop.f32.mrb[7].mxu1 }
 0x109   :  { %v248_v63 = vpop.f32.mrb[8].mxu0 }
 0x10a   :  { %v249_v0 = vadd.f32 %v248_v63, %v201_v43  ;;  %v296_v1 = vpop.f32.mrb[8].mxu1  ;;  %v250_v2 = vpop.f32.mrb[9].mxu0 }
 0x10b   :  { %v298_v5 = vpop.f32.mrb[9].mxu1  ;;  %v251_v6 = vpop.f32.mrb[10].mxu0 }
 0x10c   :  { %v297_v7 = vadd.f32 %v296_v1, %v249_v0  ;;  %v252_v8 = vadd.f32 %v251_v6, %v204_v49  ;;  %v299_v9 = vpop.f32.mrb[10].mxu1  ;;  %v253_v10 = vpop.f32.mrb[11].mxu0 }
 0x10d   :  { %v301_v12 = vpop.f32.mrb[11].mxu1 }
 0x10e   :  { %v310_v13 = vadd.f32 %v297_v7, %v47_v4  ;;  %v300_v14 = vadd.f32 %v299_v9, %v252_v8 }
 0x110   :  { %314 = vst.msk [vmem:[#allocation2] sm:$0xff] %vm30_vm1, %v310_v13  ;;  %v311_v16 = vadd.f32 %v300_v14, %v48_v11 }
 0x111   :  { %v256_v17 = vpop.f32.mrb[12].mxu0 }
 0x112   :  { %315 = vst.msk [vmem:[#allocation2 + $0x8] sm:$0xff] %vm30_vm1, %v311_v16  ;;  %v257_v18 = vadd.f32 %v256_v17, %v209_v55  ;;  %v258_v19 = vpop.f32.mrb[13].mxu0  ;;  %v304_v20 = vpop.f32.mrb[12].mxu1 }
 0x113   :  { %v259_v24 = vpop.f32.mrb[14].mxu0  ;;  %v306_v25 = vpop.f32.mrb[13].mxu1 }
 0x114   :  { %v305_v26 = vadd.f32 %v304_v20, %v257_v18  ;;  %v260_v27 = vpop.f32.mrb[15].mxu0  ;;  %v307_v28 = vpop.f32.mrb[14].mxu1 }
 0x115   :  { %v308_v29 = vpop.f32.mrb[15].mxu1 }
 0x116   :  { %v312_v31 = vadd.f32 %v305_v26, %v49_v23 }
 0x117   :  { %v321_v32 = vld [vmem:[#allocation2] sm:$0xff] }
 0x118   :  { %317 = vst.msk [vmem:[#allocation2 + $0x10] sm:$0x3] %vm33_vm0, %v312_v31  ;;  %v357_v38 = vsub.f32 %v321_v32, %v354_v34 }
 0x119   :  { %v322_v39 = vld [vmem:[#allocation2 + $0x8] sm:$0xff] }
 0x11a   :  { %v358_v41 = vsub.f32 %v322_v39, %v355_v40  ;;  %v360_v42 = vmul.f32 %v357_v38, %v357_v38 }
 0x11c   :  { %v361_v43 = vmul.f32 %v358_v41, %v358_v41 }
 0x11e   :  { %v492_v44 = vpack.c.bf16 %v361_v43, %v360_v42 }
 0x11f   :  { %v323_v46 = vld [vmem:[#allocation2 + $0x10] sm:$0x3] }
 0x120   :  { %493 = vmatpush3.bf16.msra.mxu0 %v492_v44  ;;  %v359_v47 = vsub.f32 %v323_v46, %v356_v45 }
 0x121   :  { %486 = vmatprep.subr.mxu0 %v540_v30 }
 0x122   :  { %v362_v48 = vmul.f32 %v359_v47, %v359_v47 }
 0x124   :  { %487 = vmatpush3.msk.msra.mxu0 %vm366_vm9, %v362_v48 }
 0x125   :  { %489 = vmatmul.mubr.msk.f32.vlgmr.msra.gmra.mrb[16].mxu0 %vm30_vm1, %v588_v37 }
 0x1f8   :  { %v436_v33 = vpop.f32.mrb[16].mxu0 }
 0x1f9   :  { %v440_v49 = vmul.f32 %v588_v37, %v436_v33  ;;  %v490_v50 = vpop.f32.mrb[17].mxu0 }
 0x1fb   :  { %v441_v35 = vsel %vm33_vm0, %v440_v49, 0.0 }
 0x1fc   :  { %442 = vadd.xlane.f32.xlu0 %v441_v35 }
 0x289   :  { %v443_v51 = vpop.xlane.xlu0 %442 }
 0x28a   :  { %510 = vrsqrt.f32 %v443_v51  ;;  %vm446_vm10 = vcmp.eq.f32.partialorder %v443_v51, inf  ;;  %v449_v54 = vand.u32 2147483648, %v443_v51  ;;  %vm448_vm11 = vcmp.eq.f32.partialorder %v443_v51, 0.0 }
 0x294   :  { %v511_v52 = vpop.eup %510 }
 0x295   :  { %v445_v53 = vmul.f32 %v511_v52, %v443_v51 }
 0x297   :  { %v447_v30 = vsel %vm446_vm10, %v443_v51, %v445_v53 }
 0x298   :  { %v450_v55 = vsel %vm448_vm11, %v449_v54, %v447_v30 }
 0x299   :  { %v451_v56 = vmul.f32 3.90625e-05, %v450_v55 }
 0x29b   :  { %453 = vst.msk [vmem:[%s611_s2] sm:$0x3] %vm452_vm12, %v451_v56 }
 0x29c   :  { %458 = vsyncpa [#allocation4], 1 }

</bundles_post_ra>
